<compile_context>
chip_gen: v7x
topology: tpu7x:2x2x1
jax: 0.10.0
libtpu: 0.0.40
codegen_flags: <defaults>
</compile_context>

<pallas_src>
import functools

import jax
import jax.numpy as jnp
from jax.experimental import pallas as pl
from jax.experimental.pallas import tpu as pltpu


def _cdiv(a, b):
    return -(-a // b)


def _round_up(x, m):
    return _cdiv(x, m) * m


def _gail_mlp_kernel(n_states, x_ref, act_ref, w1t_ref, b1_ref, w2t_ref,
                     b2_ref, w3_ref, b3_ref, logit_ref, d_ref):
    d_in, tile_b = x_ref.shape          # d_in = n_states + n_actions
    cdt = w1t_ref.dtype                 # MXU input dtype (f32 or bf16)

    # Fused one_hot(action): rows [n_states, d_in) of x arrive zero-padded
    # from the wrapper; drop a 1.0 into row (n_states + action) of each batch
    # column with a sublane-iota == compare (pure VPU work).
    # NOTE: out-of-range / negative action ids yield an all-zero one-hot row,
    # matching jax.nn.one_hot / F.one_hot-with-clamp semantics.
    row_ids = jax.lax.broadcasted_iota(jnp.int32, (d_in, tile_b), 0)
    onehot = (row_ids == (act_ref[...] + n_states)).astype(jnp.float32)
    x = (x_ref[...] + onehot).astype(cdt)                      # (D_in, TILE_B)

    # Layer 1 + 2: single MXU dot each, batch on the lane (N) axis.
    h1 = jnp.tanh(
        jnp.dot(w1t_ref[...], x, preferred_element_type=jnp.float32)
        + b1_ref[...])                                         # (H, TILE_B) f32
    h2 = jnp.tanh(
        jnp.dot(w2t_ref[...], h1.astype(cdt),
                preferred_element_type=jnp.float32)
        + b2_ref[...])                                         # (H, TILE_B) f32

    # Final H -> 1 projection: VPU multiply + XLU sublane reduce gives a
    # lane-dense (1, TILE_B) logit row without paying for an M=1 MXU matmul.
    logits = jnp.sum(w3_ref[...] * h2, axis=0, keepdims=True) + b3_ref[...]
    logit_ref[...] = logits                                    # pre-sigmoid
    d_ref[...] = jax.nn.sigmoid(logits)                        # D(s, a)


def _choose_tiling(batch, tile_b_cap):
    """Lane-dense tiles (multiples of 128); >=2 grid steps when batch allows."""
    nblk = _cdiv(batch, 128)                     # 128-lane blocks needed
    cap_blocks = max(1, tile_b_cap // 128)
    nsteps = max(1, _cdiv(nblk, cap_blocks))
    if nblk >= 2:
        nsteps = max(nsteps, 2)                  # v7x: feed both TensorCores
    tb = 128 * _cdiv(nblk, nsteps)
    return tb, tb * nsteps, nsteps


def gail_discriminator_logits_and_probs(state, action, params, n_actions,
                                        *, tile_b_cap=4096):
    """Returns (logits, D) with shape (B,) each; D == sigmoid(logits)."""
    w1t, b1, w2t, b2, w3c, b3 = params
    B, n_states = state.shape
    H = w2t.shape[0]
    d_in = w1t.shape[1]
    assert d_in == n_states + n_actions

    state = state.astype(jnp.float32)
    action = action.astype(jnp.int32).reshape(1, B)

    tb, B_pad, nsteps = _choose_tiling(B, tile_b_cap)

    # Batch-on-lanes input layout: transpose state to (n_states, B) and pad
    # with n_actions zero rows (one-hot target rows) + zero batch columns.
    x_t = jnp.pad(state.T, ((0, n_actions), (0, B_pad - B)))   # (d_in, B_pad)
    action = jnp.pad(action, ((0, 0), (0, B_pad - B)))         # (1, B_pad)

    cost = pl.CostEstimate(
        flops=2 * B_pad * (d_in * H + H * H + H),
        transcendentals=B_pad * (2 * H + 1),
        bytes_accessed=4 * (B_pad * (d_in + 1 + 2)
                            + d_in * H + H * H + 3 * H + 1),
    )

    logits, probs = pl.pallas_call(
        functools.partial(_gail_mlp_kernel, n_states),
        out_shape=(jax.ShapeDtypeStruct((1, B_pad), jnp.float32),
                   jax.ShapeDtypeStruct((1, B_pad), jnp.float32)),
        grid=(nsteps,),
        in_specs=[
            pl.BlockSpec((d_in, tb), lambda i: (0, i)),        # x^T tile
            pl.BlockSpec((1, tb), lambda i: (0, i)),           # action row
            pl.BlockSpec((H, d_in), lambda i: (0, 0)),         # W1^T (resident)
            pl.BlockSpec((H, 1), lambda i: (0, 0)),            # b1 (column)
            pl.BlockSpec((H, H), lambda i: (0, 0)),            # W2^T
            pl.BlockSpec((H, 1), lambda i: (0, 0)),            # b2
            pl.BlockSpec((H, 1), lambda i: (0, 0)),            # W3 (column)
            pl.BlockSpec((1, 1), lambda i: (0, 0)),            # b3
        ],
        out_specs=(pl.BlockSpec((1, tb), lambda i: (0, i)),    # logits
                   pl.BlockSpec((1, tb), lambda i: (0, i))),   # sigmoid(logits)
        compiler_params=pltpu.CompilerParams(
            dimension_semantics=("parallel",)),
        cost_estimate=cost,
    )(x_t, action, w1t, b1, w2t, b2, w3c, b3)

    return logits[0, :B], probs[0, :B]


def gail_discriminator_forward(state, action, params, n_actions, **kw):
    """GAILDiscriminator.forward: D(s, a) in (0, 1), shape (B,)."""
    _, probs = gail_discriminator_logits_and_probs(state, action, params,
                                                   n_actions, **kw)
    return probs


def gail_predict_reward(state, action, params, n_actions, **kw):
    """GAILDiscriminator.predict_reward: log(D) - log1p(-D) == pre-sigmoid logit."""
    logits, _ = gail_discriminator_logits_and_probs(state, action, params,
                                                    n_actions, **kw)
    return logits


def init_params(key, n_states, n_actions, hidden_dim,
                matmul_dtype=jnp.float32):
    """PyTorch-Linear-style uniform(-1/sqrt(fan_in), +) init.

    Weights are kept in PyTorch's (out, in) orientation, which is exactly what
    the transposed (batch-on-lanes) kernel wants as the matmul LHS.  Set
    matmul_dtype=jnp.bfloat16 on v6e/v7x to halve MXU pushes / weight bytes
    (accumulation stays f32 in-kernel).
    """
    d_in = n_states + n_actions
    ks = jax.random.split(key, 6)

    def lin(kw_, kb_, fan_in, fan_out):
        bound = float(fan_in) ** -0.5
        w = jax.random.uniform(kw_, (fan_out, fan_in), jnp.float32, -bound, bound)
        b = jax.random.uniform(kb_, (fan_out, 1), jnp.float32, -bound, bound)
        return w, b

    w1t, b1 = lin(ks[0], ks[1], d_in, hidden_dim)          # (H, d_in), (H, 1)
    w2t, b2 = lin(ks[2], ks[3], hidden_dim, hidden_dim)    # (H, H),   (H, 1)
    w3r, b3 = lin(ks[4], ks[5], hidden_dim, 1)             # (1, H),   (1, 1)
    w3c = w3r.T                                            # (H, 1) column

    return (w1t.astype(matmul_dtype), b1,
            w2t.astype(matmul_dtype), b2,
            w3c, b3)


if __name__ == "__main__":
    # Small shapes consistent with the module's forward.
    B, n_states, n_actions, hidden_dim = 8, 12, 4, 32

    key = jax.random.PRNGKey(0)
    k_params, k_state, k_action = jax.random.split(key, 3)

    params = init_params(k_params, n_states, n_actions, hidden_dim)
    state = jax.random.normal(k_state, (B, n_states), jnp.float32)
    action = jax.random.randint(k_action, (B,), 0, n_actions, jnp.int32)

    logits, D = gail_discriminator_logits_and_probs(state, action, params,
                                                    n_actions)
    D = jax.block_until_ready(D)
    logits = jax.block_until_ready(logits)
    reward = gail_predict_reward(state, action, params, n_actions)

    # Reference in plain JAX (same math as the PyTorch module).
    w1t, b1, w2t, b2, w3c, b3 = params
    x_ref = jnp.concatenate(
        [state, jax.nn.one_hot(action, n_actions, dtype=jnp.float32)], axis=1)
    h = jnp.tanh(x_ref @ w1t.astype(jnp.float32).T + b1[:, 0])
    h = jnp.tanh(h @ w2t.astype(jnp.float32).T + b2[:, 0])
    logits_ref = (h @ w3c + b3[0])[:, 0]
    D_ref = jax.nn.sigmoid(logits_ref)

    assert D.shape == (B,) and logits.shape == (B,)
    assert jnp.allclose(D, D_ref, atol=1e-5, rtol=1e-5)
    assert jnp.allclose(logits, logits_ref, atol=1e-5, rtol=1e-5)
    assert jnp.allclose(reward, logits_ref, atol=1e-5, rtol=1e-5)
    print("KERNEL_OK")
</pallas_src>

<mosaic_0001>
module attributes {stable_mosaic.version = 11 : i64} {
  func.func @_gail_mlp_kernel(%arg0: i32, %arg1: memref<16x128xf32, #tpu.memory_space<vmem>>, %arg2: memref<1x128xi32, #tpu.memory_space<vmem>>, %arg3: memref<32x16xf32, #tpu.memory_space<vmem>>, %arg4: memref<32x1xf32, #tpu.memory_space<vmem>>, %arg5: memref<32x32xf32, #tpu.memory_space<vmem>>, %arg6: memref<32x1xf32, #tpu.memory_space<vmem>>, %arg7: memref<32x1xf32, #tpu.memory_space<vmem>>, %arg8: memref<1x1xf32, #tpu.memory_space<vmem>>, %arg9: memref<1x128xf32, #tpu.memory_space<vmem>>, %arg10: memref<1x128xf32, #tpu.memory_space<vmem>>) attributes {dimension_semantics = [#tpu.dimension_semantics<parallel>], iteration_bounds = array<i64: 1>, scalar_prefetch = 0 : i64, scratch_operands = 0 : i64, tpu.core_type = #tpu.core_type<tc>, window_params = [{transform_indices = @transform_0, window_bounds = array<i64: 16, 128>}, {transform_indices = @transform_1, window_bounds = array<i64: 1, 128>}, {pipeline_mode = #tpu.pipeline_mode<synchronous>, transform_indices = @transform_2, window_bounds = array<i64: 32, 16>}, {pipeline_mode = #tpu.pipeline_mode<synchronous>, transform_indices = @transform_3, window_bounds = array<i64: 32, 1>}, {pipeline_mode = #tpu.pipeline_mode<synchronous>, transform_indices = @transform_4, window_bounds = array<i64: 32, 32>}, {pipeline_mode = #tpu.pipeline_mode<synchronous>, transform_indices = @transform_5, window_bounds = array<i64: 32, 1>}, {pipeline_mode = #tpu.pipeline_mode<synchronous>, transform_indices = @transform_6, window_bounds = array<i64: 32, 1>}, {pipeline_mode = #tpu.pipeline_mode<synchronous>, transform_indices = @transform_7, window_bounds = array<i64: 1, 1>}, {transform_indices = @transform_8, window_bounds = array<i64: 1, 128>}, {transform_indices = @transform_9, window_bounds = array<i64: 1, 128>}]} {
    %0 = tpu.iota {dimensions = array<i32: 0>} : vector<16x128xi32>
    %c0 = arith.constant 0 : index
    %c0_0 = arith.constant 0 : index
    %1 = vector.load %arg2[%c0, %c0_0] : memref<1x128xi32, #tpu.memory_space<vmem>>, vector<1x128xi32>
    %c12_i32 = arith.constant 12 : i32
    %2 = vector.broadcast %c12_i32 : i32 to vector<1x128xi32>
    %3 = arith.addi %1, %2 : vector<1x128xi32>
    %4 = vector.broadcast %3 : vector<1x128xi32> to vector<16x128xi32>
    %5 = arith.cmpi eq, %0, %4 : vector<16x128xi32>
    %6 = arith.extui %5 : vector<16x128xi1> to vector<16x128xi32>
    %7 = arith.sitofp %6 : vector<16x128xi32> to vector<16x128xf32>
    %c0_1 = arith.constant 0 : index
    %c0_2 = arith.constant 0 : index
    %8 = vector.load %arg1[%c0_1, %c0_2] : memref<16x128xf32, #tpu.memory_space<vmem>>, vector<16x128xf32>
    %9 = arith.addf %8, %7 : vector<16x128xf32>
    %c0_3 = arith.constant 0 : index
    %c0_4 = arith.constant 0 : index
    %10 = vector.load %arg3[%c0_3, %c0_4] : memref<32x16xf32, #tpu.memory_space<vmem>>, vector<32x16xf32>
    %cst = arith.constant dense<0.000000e+00> : vector<32x128xf32>
    %11 = tpu.matmul %10, %9, %cst {dimension_numbers = #tpu.dot_dimension_numbers<[1], [0], [0], [1], [0, 0, 1, 1], [], []>} : vector<32x16xf32>, vector<16x128xf32>, vector<32x128xf32> -> vector<32x128xf32>
    %c0_5 = arith.constant 0 : index
    %c0_6 = arith.constant 0 : index
    %12 = vector.load %arg4[%c0_5, %c0_6] : memref<32x1xf32, #tpu.memory_space<vmem>>, vector<32x1xf32>
    %13 = vector.broadcast %12 : vector<32x1xf32> to vector<32x128xf32>
    %14 = arith.addf %11, %13 : vector<32x128xf32>
    %15 = math.tanh %14 : vector<32x128xf32>
    %c0_7 = arith.constant 0 : index
    %c0_8 = arith.constant 0 : index
    %16 = vector.load %arg5[%c0_7, %c0_8] : memref<32x32xf32, #tpu.memory_space<vmem>>, vector<32x32xf32>
    %cst_9 = arith.constant dense<0.000000e+00> : vector<32x128xf32>
    %17 = tpu.matmul %16, %15, %cst_9 {dimension_numbers = #tpu.dot_dimension_numbers<[1], [0], [0], [1], [0, 0, 1, 1], [], []>} : vector<32x32xf32>, vector<32x128xf32>, vector<32x128xf32> -> vector<32x128xf32>
    %c0_10 = arith.constant 0 : index
    %c0_11 = arith.constant 0 : index
    %18 = vector.load %arg6[%c0_10, %c0_11] : memref<32x1xf32, #tpu.memory_space<vmem>>, vector<32x1xf32>
    %19 = vector.broadcast %18 : vector<32x1xf32> to vector<32x128xf32>
    %20 = arith.addf %17, %19 : vector<32x128xf32>
    %21 = math.tanh %20 : vector<32x128xf32>
    %c0_12 = arith.constant 0 : index
    %c0_13 = arith.constant 0 : index
    %22 = vector.load %arg7[%c0_12, %c0_13] : memref<32x1xf32, #tpu.memory_space<vmem>>, vector<32x1xf32>
    %23 = vector.broadcast %22 : vector<32x1xf32> to vector<32x128xf32>
    %24 = arith.mulf %23, %21 : vector<32x128xf32>
    %cst_14 = arith.constant dense<0.000000e+00> : vector<128xf32>
    %25 = vector.multi_reduction <add>, %24, %cst_14 [0] : vector<32x128xf32> to vector<128xf32>
    %26 = vector.shape_cast %25 : vector<128xf32> to vector<1x128xf32>
    %c0_15 = arith.constant 0 : index
    %c0_16 = arith.constant 0 : index
    %27 = vector.load %arg8[%c0_15, %c0_16] : memref<1x1xf32, #tpu.memory_space<vmem>>, vector<1x1xf32>
    %28 = vector.broadcast %27 : vector<1x1xf32> to vector<1x128xf32>
    %29 = arith.addf %26, %28 : vector<1x128xf32>
    %c0_17 = arith.constant 0 : index
    %c0_18 = arith.constant 0 : index
    %30 = vector.load %arg9[%c0_17, %c0_18] : memref<1x128xf32, #tpu.memory_space<vmem>>, vector<1x128xf32>
    tpu.vector_store %arg9[%c0_17, %c0_18], %29 {strides = array<i32>} : memref<1x128xf32, #tpu.memory_space<vmem>>, vector<1x128xf32>,
    %31 = arith.negf %29 : vector<1x128xf32>
    %32 = math.exp %31 : vector<1x128xf32>
    %cst_19 = arith.constant 1.000000e+00 : f32
    %33 = vector.broadcast %cst_19 : f32 to vector<1x128xf32>
    %34 = arith.addf %33, %32 : vector<1x128xf32>
    %35 = arith.divf %33, %34 : vector<1x128xf32>
    %c0_20 = arith.constant 0 : index
    %c0_21 = arith.constant 0 : index
    %36 = vector.load %arg10[%c0_20, %c0_21] : memref<1x128xf32, #tpu.memory_space<vmem>>, vector<1x128xf32>
    tpu.vector_store %arg10[%c0_20, %c0_21], %35 {strides = array<i32>} : memref<1x128xf32, #tpu.memory_space<vmem>>, vector<1x128xf32>,
    return
  }
  func.func @transform_0(%arg0: i32) -> (i32, i32) {
    %c0_i32 = arith.constant 0 : i32
    %c0_i32_0 = arith.constant 0 : i32
    return %c0_i32, %arg0 : i32, i32
  }
  func.func @transform_1(%arg0: i32) -> (i32, i32) {
    %c0_i32 = arith.constant 0 : i32
    %c0_i32_0 = arith.constant 0 : i32
    return %c0_i32, %arg0 : i32, i32
  }
  func.func @transform_2(%arg0: i32) -> (i32, i32) {
    %c0_i32 = arith.constant 0 : i32
    %c0_i32_0 = arith.constant 0 : i32
    %c0_i32_1 = arith.constant 0 : i32
    return %c0_i32, %c0_i32_0 : i32, i32
  }
  func.func @transform_3(%arg0: i32) -> (i32, i32) {
    %c0_i32 = arith.constant 0 : i32
    %c0_i32_0 = arith.constant 0 : i32
    %c0_i32_1 = arith.constant 0 : i32
    return %c0_i32, %c0_i32_0 : i32, i32
  }
  func.func @transform_4(%arg0: i32) -> (i32, i32) {
    %c0_i32 = arith.constant 0 : i32
    %c0_i32_0 = arith.constant 0 : i32
    %c0_i32_1 = arith.constant 0 : i32
    return %c0_i32, %c0_i32_0 : i32, i32
  }
  func.func @transform_5(%arg0: i32) -> (i32, i32) {
    %c0_i32 = arith.constant 0 : i32
    %c0_i32_0 = arith.constant 0 : i32
    %c0_i32_1 = arith.constant 0 : i32
    return %c0_i32, %c0_i32_0 : i32, i32
  }
  func.func @transform_6(%arg0: i32) -> (i32, i32) {
    %c0_i32 = arith.constant 0 : i32
    %c0_i32_0 = arith.constant 0 : i32
    %c0_i32_1 = arith.constant 0 : i32
    return %c0_i32, %c0_i32_0 : i32, i32
  }
  func.func @transform_7(%arg0: i32) -> (i32, i32) {
    %c0_i32 = arith.constant 0 : i32
    %c0_i32_0 = arith.constant 0 : i32
    %c0_i32_1 = arith.constant 0 : i32
    return %c0_i32, %c0_i32_0 : i32, i32
  }
  func.func @transform_8(%arg0: i32) -> (i32, i32) {
    %c0_i32 = arith.constant 0 : i32
    %c0_i32_0 = arith.constant 0 : i32
    return %c0_i32, %arg0 : i32, i32
  }
  func.func @transform_9(%arg0: i32) -> (i32, i32) {
    %c0_i32 = arith.constant 0 : i32
    %c0_i32_0 = arith.constant 0 : i32
    return %c0_i32, %arg0 : i32, i32
  }
}

</mosaic_0001>

<bundles_post_ra>
// kernel: tpu_custom_call.1
= control target key start
LH: loop header
LB: loop body
LE: loop exit
PB: predicated region body
PF: predicated region fallthrough
CT: control target
= control target key end

     0   :  { %s700_s0 = inlined_call_operand.vmem [shape: f32[16,128], index: 0, kind: input, shape index: {}]   ;;  %s701_s1 = inlined_call_operand.vmem [shape: s32[1,128], index: 1, kind: input, shape index: {}]   ;;  %s702_s2 = inlined_call_operand.vmem [shape: f32[32,16], index: 2, kind: input, shape index: {}]   ;;  %s703_s3 = inlined_call_operand.vmem [shape: f32[32,1], index: 3, kind: input, shape index: {}]   ;;  %s704_s4 = inlined_call_operand.vmem [shape: f32[32,32], index: 4, kind: input, shape index: {}]   ;;  %s705_s5 = inlined_call_operand.vmem [shape: f32[32,1], index: 5, kind: input, shape index: {}]   ;;  %s706_s6 = inlined_call_operand.vmem [shape: f32[32,1], index: 6, kind: input, shape index: {}]   ;;  %s707_s7 = inlined_call_operand.<no memory space> [shape: f32[1,1], index: 7, kind: input, shape index: {}]   ;;  %s708_s8 = inlined_call_operand.hbm [shape: f32[1,128], index: 8, kind: output, shape index: {0}]   ;;  %s709_s9 = inlined_call_operand.hbm [shape: f32[1,128], index: 9, kind: output, shape index: {1}]  }
   0x1   :  { %v15_v0 = vstv %s707_s7 }
   0x2   :  { %16 = vst [vmem:[#allocation2] sm:$0x1] %v15_v0 }
   0x3   :  { %17 = vsyncpa [#allocation4], 0  ;;  %v35_v1 = vlaneseq  ;;  %v38_v2 = vld [vmem:[%s701_s1] sm:$0x1]  ;;  %vm82_vm0 = vcmask 130048   ;;  %v533_v6 = vmov 0  }
   0x4   :  { %v54_v3 = vld [vmem:[%s702_s2] sm:$0xff]  ;;  %v39_v5 = vadd.s32 12, %v38_v2  ;;  %463 = vset.pattern.permute.xlu0 %v533_v6  ;;  %464 = vset.pattern.permute.xlu1 %v533_v6  ;;  %v60_v8 = vld [vmem:[%s703_s3 + $0x10] sm:$0xff]  ;;  %v59_v11 = vld [vmem:[%s703_s3 + $0x8] sm:$0xff] }
   0x5   :  { %v596_v4 = vshrl.u32 %v35_v1, 7  ;;  %427 = vmatprep.mubr.msk.f32.mxu0 %vm82_vm0, %v54_v3  ;;  %v58_v7 = vld [vmem:[%s703_s3] sm:$0xff]  ;;  %74 = vperm.xlu1 %464, %v60_v8   ;;  %v61_v12 = vld [vmem:[%s703_s3 + $0x18] sm:$0xff] }
   0x6   :  { %64 = vperm.xlu0 %463, %v58_v7  }
   0x7   :  { %v37_v9 = vadd.s32 8, %v596_v4  ;;  %v42_v10 = vsub.s32 0, %v596_v4 }
   0x9   :  { %v43_v13 = vrot.slane %v39_v5, %v42_v10 }
   0xa   :  { %18 = vsyncpa [#allocation6], 0  ;;  %v50_v14 = vld [vmem:[%s700_s0] sm:$0xff]  ;;  %v51_v15 = vld [vmem:[%s700_s0 + $0x8] sm:$0xff]  ;;  %69 = vperm.xlu0 %463, %v59_v11   ;;  %79 = vperm.xlu1 %464, %v61_v12   ;;  %v534_v17 = vmov 0.0   ;;  %vm212_vm3 = vcmask 261120  }
   0xb   :  { %vm44_vm1 = vcmp.eq.s32.totalorder %v596_v4, %v43_v13  ;;  %vm45_vm2 = vcmp.eq.s32.totalorder %v37_v9, %v43_v13  ;;  %v188_v16 = vld [vmem:[%s705_s5] sm:$0xff]  ;;  %v189_v20 = vld [vmem:[%s705_s5 + $0x8] sm:$0xff]  ;;  %v190_v24 = vld [vmem:[%s705_s5 + $0x10] sm:$0xff] }
   0xc   :  { %v398_v18 = vsel %vm44_vm1, 1.0, %v534_v17  ;;  %v399_v19 = vsel %vm45_vm2, 1.0, %v534_v17  ;;  %v191_v25 = vld [vmem:[%s705_s5 + $0x18] sm:$0xff]  ;;  %v55_v26 = vld [vmem:[%s702_s2 + $0x8] sm:$0xff]  ;;  %v56_v27 = vld [vmem:[%s702_s2 + $0x10] sm:$0xff] }
   0xd   :  { %v52_v21 = vadd.f32 %v398_v18, %v50_v14  ;;  %v53_v22 = vadd.f32 %v399_v19, %v51_v15  ;;  %v314_v28 = vld [vmem:[%s706_s6] sm:$0xff]  ;;  %v315_v29 = vld [vmem:[%s706_s6 + $0x8] sm:$0xff]  ;;  %v57_v30 = vld [vmem:[%s702_s2 + $0x18] sm:$0xff] }
   0xe   :  { %194 = vperm.xlu0 %463, %v188_v16   ;;  %199 = vperm.xlu1 %464, %v189_v20   ;;  %v316_v31 = vld [vmem:[%s706_s6 + $0x10] sm:$0xff]  ;;  %v317_v32 = vld [vmem:[%s706_s6 + $0x18] sm:$0xff]  ;;  %v351_v33 = vld [vmem:[#allocation2] sm:$0x1] }
   0xf   :  { %v447_v23 = vpack.c.bf16 %v53_v22, %v52_v21  ;;  %v184_v34 = vld [vmem:[%s704_s4] sm:$0xff]  ;;  %v185_v53 = vld [vmem:[%s704_s4 + $0x8] sm:$0xff]  ;;  %v186_v54 = vld [vmem:[%s704_s4 + $0x10] sm:$0xff] }
  0x10   :  { %441 = vmatprep.mubr.msk.f32.mxu1 %vm212_vm3, %v184_v34  ;;  %v187_v55 = vld [vmem:[%s704_s4 + $0x18] sm:$0xff]  ;;  %s535_s4 = smov [#allocation3]  }
  0x11   :  { %448 = vmatprep.subr.bf16.mxu0 %v447_v23  ;;  %s376_s3 = sshll.u32 %s535_s4, 4  ;;  %s377_s3 = int_to_ptr.vmem [resolvable:$true] %s376_s3 }
  0x12   :  { %450 = vmatpush3.bf16.msra.mxu0 %v447_v23  ;;  %204 = vperm.xlu0 %463, %v190_v24   ;;  %s485_s27 = scalar_lea.vmem %s377_s3, 16  ;;  %s489_s0 = scalar_lea.vmem %s377_s3, 32 }
  0x13   :  { %209 = vperm.xlu1 %464, %v191_v25   ;;  %p486_p0 = scmp.ne.s32.totalorder %s377_s3, %s485_s27  ;;  %p490_p1 = scmp.lt.s32.totalorder %s377_s3, %s377_s3 }
  0x14   :  { %p491_p2 = scmp.lt.s32.totalorder %s489_s0, %s485_s27 }
  0x15   :  { %428 = vmatmul.mubr.msk.f32.vlgmr.msra.gmra.mrb[0].mxu0 %vm82_vm0, %v55_v26 }
  0x16   :  { %430 = vmatprep.mubr.msk.f32.mxu0 %vm82_vm0, %v56_v27  ;;  %320 = vperm.xlu0 %463, %v314_v28   ;;  %p492_p3 = por %p491_p2, %p490_p1 }
  0x17   :  { %325 = vperm.xlu1 %464, %v315_v29  }
  0x18   :  { %p493_p4 = pnand %p492_p3, %p486_p0 }
  0x19   :  { %431 = vmatmul.mubr.msk.f32.gmra.mrb[2].mxu0 %vm82_vm0, %v57_v30 }
  0x1a   :  { %330 = vperm.xlu0 %463, %v316_v31  }
  0x1b   :  { %335 = vperm.xlu1 %464, %v317_v32  }
  0x1e   :  { %354 = vperm.xlu0 %463, %v351_v33  }
  0x84   :  { %v75_v36 = vpop.permute.xlu1 %74 }
  0x85   :  { %v65_v35 = vpop.permute.xlu0 %64 }
  0x89   :  { %v70_v37 = vpop.permute.xlu0 %69  ;;  %v80_v42 = vpop.permute.xlu1 %79 }
  0x8d   :  { %v200_v56 = vpop.permute.xlu1 %199  ;;  %v195_v57 = vpop.permute.xlu0 %194 }
  0x91   :  { %v205_v0 = vpop.permute.xlu0 %204 }
  0x92   :  { %v210_v62 = vpop.permute.xlu1 %209 }
  0x95   :  { %v321_v5 = vpop.permute.xlu0 %320 }
  0x96   :  { %v326_v7 = vpop.permute.xlu1 %325 }
  0x99   :  { %v331_v15 = vpop.permute.xlu0 %330 }
  0x9a   :  { %v336_v17 = vpop.permute.xlu1 %335 }
  0x9d   :  { %v355_v25 = vpop.permute.xlu0 %354 }
  0x9e   :  { %v360_v27 = vrot.slane %v355_v25, %v42_v10 }
  0xe8   :  { %v429_v38 = vpop.f32.mrb[0].mxu0 }
  0xe9   :  { %v167_v39 = vadd.f32 %v429_v38, %v70_v37  ;;  %v161_v40 = vpop.f32.mrb[1].mxu0 }
  0xea   :  { %v162_v41 = vadd.f32 %v161_v40, %v65_v35 }
  0xeb   :  { %465 = vtanh.f32 %v167_v39 }
  0xec   :  { %467 = vtanh.f32 %v162_v41  ;;  %v432_v43 = vpop.f32.mrb[2].mxu0 }
  0xed   :  { %v177_v44 = vadd.f32 %v432_v43, %v80_v42  ;;  %v171_v45 = vpop.f32.mrb[3].mxu0 }
  0xee   :  { %v172_v46 = vadd.f32 %v171_v45, %v75_v36 }
  0xef   :  { %469 = vtanh.f32 %v177_v44 }
  0xf0   :  { %471 = vtanh.f32 %v172_v46 }
  0xf5   :  { %v466_v47 = vpop.eup %465 }
  0xf6   :  { %v468_v48 = vpop.eup %467 }
  0xf7   :  { %v451_v49 = vpack.c.bf16 %v466_v47, %v468_v48 }
  0xf9   :  { %v470_v50 = vpop.eup %469  ;;  %452 = vmatprep.subr.bf16.mxu1 %v451_v49 }
  0xfa   :  { %v472_v51 = vpop.eup %471  ;;  %454 = vmatpush3.bf16.msra.mxu1 %v451_v49 }
  0xfb   :  { %v455_v52 = vpack.c.bf16 %v470_v50, %v472_v51 }
  0xfd   :  { %456 = vmatprep.subr.bf16.mxu1 %v455_v52 }
  0xfe   :  { %458 = vmatpush3.bf16.msra.mxu1 %v455_v52 }
 0x101   :  { %442 = vmatmul.mubr.msk.f32.vlgmr.msra.gmra.mrb[0].mxu1 %vm212_vm3, %v185_v53 }
 0x102   :  { %444 = vmatprep.mubr.msk.f32.mxu1 %vm212_vm3, %v186_v54 }
 0x105   :  { %445 = vmatmul.mubr.msk.f32.gmra.mrb[2].mxu1 %vm212_vm3, %v187_v55 }
 0x1d4   :  { %v443_v58 = vpop.f32.mrb[0].mxu1 }
 0x1d5   :  { %v297_v59 = vadd.f32 %v443_v58, %v200_v56  ;;  %v291_v60 = vpop.f32.mrb[1].mxu1 }
 0x1d6   :  { %v292_v61 = vadd.f32 %v291_v60, %v195_v57 }
 0x1d7   :  { %473 = vtanh.f32 %v297_v59 }
 0x1d8   :  { %475 = vtanh.f32 %v292_v61  ;;  %v446_v63 = vpop.f32.mrb[2].mxu1 }
 0x1d9   :  { %v307_v1 = vadd.f32 %v446_v63, %v210_v62  ;;  %v301_v2 = vpop.f32.mrb[3].mxu1 }
 0x1da   :  { %v302_v3 = vadd.f32 %v301_v2, %v205_v0 }
 0x1db   :  { %477 = vtanh.f32 %v307_v1 }
 0x1dc   :  { %479 = vtanh.f32 %v302_v3 }
 0x1e1   :  { %v474_v6 = vpop.eup %473 }
 0x1e2   :  { %v476_v8 = vpop.eup %475  ;;  %v339_v9 = vmul.f32 %v474_v6, %v326_v7 }
 0x1e3   :  { %v338_v11 = vmul.f32 %v476_v8, %v321_v5 }
 0x1e5   :  { %v478_v12 = vpop.eup %477  ;;  %v342_v13 = vadd.f32 %v339_v9, %v338_v11 }
 0x1e6   :  { %v480_v14 = vpop.eup %479  ;;  %v341_v18 = vmul.f32 %v478_v12, %v336_v17 }
 0x1e7   :  { %v340_v16 = vmul.f32 %v480_v14, %v331_v15 }
 0x1e9   :  { %v343_v19 = vadd.f32 %v342_v13, %v340_v16 }
 0x1eb   :  { %v344_v20 = vadd.f32 %v343_v19, %v341_v18 }
 0x1ed   :  { %v345_v21 = vrot.slane %v344_v20, 4 }
 0x1ef   :  { %v346_v22 = vadd.f32 %v345_v21, %v344_v20 }
 0x1f1   :  { %v347_v23 = vrot.slane %v346_v22, 2 }
 0x1f3   :  { %v348_v24 = vadd.f32 %v347_v23, %v346_v22 }
 0x1f5   :  { %v349_v26 = vrot.slane %v348_v24, 1 }
 0x1f7   :  { %v350_v28 = vadd.f32 %v349_v26, %v348_v24 }
 0x1f9   :  { %v361_v29 = vadd.f32 %v360_v27, %v350_v28 }
 0x1fb   :  { %362 = vst [vmem:[#allocation3] sm:$0x1] %v361_v29  ;;  %v408_v30 = vmul.f32 -1.442695, %v361_v29 }
 0x1fc   :  { %496 = shalt.err (!%p493_p4)
}
 0x1fd   :  { %s497_s30 = scalar_lea.hbm %s708_s8, 16 }
 0x1fe   :  { %p498_p5 = scmp.ne.s32.totalorder %s708_s8, %s497_s30  ;;  %p501_p6 = scmp.lt.u32.totalorder %s497_s30, %s708_s8 }
 0x200   :  { %p503_p7 = pnand %p501_p6, %p498_p5 }
 0x202   :  { %506 = shalt.err (!%p503_p7)
}
 0x203   :  { %379 = dma.vmem_to_hbm [thread:$0]  %s377_s3, 16, %s708_s8, [#allocation4]   ;;  %481 = vpow2.f32 %v408_v30 }
 0x204   :  { %s536_s15 = smov [#allocation5]  }
 0x205   :  { %s386_s16 = sshll.u32 %s536_s15, 4  ;;  %s387_s16 = int_to_ptr.vmem [resolvable:$true] %s386_s16 }
 0x206   :  { %s507_s5 = scalar_lea.vmem %s387_s16, 16  ;;  %s511_s1 = scalar_lea.vmem %s387_s16, 32 }
 0x207   :  { %p508_p8 = scmp.ne.s32.totalorder %s387_s16, %s507_s5  ;;  %p512_p9 = scmp.lt.s32.totalorder %s387_s16, %s387_s16 }
 0x208   :  { %p513_p10 = scmp.lt.s32.totalorder %s511_s1, %s507_s5 }
 0x20a   :  { %p514_p11 = por %p513_p10, %p512_p9 }
 0x20c   :  { %p515_p12 = pnand %p514_p11, %p508_p8 }
 0x20d   :  { %v482_v4 = vpop.eup %481 }
 0x20e   :  { %v366_v10 = vadd.f32 1.0, %v482_v4 }
 0x210   :  { %483 = vrcp.f32 %v366_v10 }
 0x21a   :  { %v484_v31 = vpop.eup %483 }
 0x21b   :  { %369 = vst [vmem:[#allocation5] sm:$0x1] %v484_v31 }
 0x21c   :  { %518 = shalt.err (!%p515_p12)
}
 0x21d   :  { %s519_s8 = scalar_lea.hbm %s709_s9, 16 }
 0x21e   :  { %p520_p13 = scmp.ne.s32.totalorder %s709_s9, %s519_s8  ;;  %p523_p0 = scmp.lt.u32.totalorder %s519_s8, %s709_s9 }
 0x220   :  { %p525_p1 = pnand %p523_p0, %p520_p13 }
 0x222   :  { %528 = shalt.err (!%p525_p1)
}
 0x223   :  { %389 = dma.vmem_to_hbm [thread:$0]  %s387_s16, 16, %s709_s9, [#allocation6]  }
 0x224   :  { %529 = dma.done.wait [#allocation4], 16  }
 0x225   :  { %530 = vsyncadd [#allocation4], 4294967280 }
 0x226   :  { %531 = dma.done.wait [#allocation6], 16  }
 0x227   :  { %532 = vsyncadd [#allocation6], 4294967280 }
 0x228   :  { %396 = vsyncpa [#allocation4], 1 }
 0x229   :  { %397 = vsyncpa [#allocation6], 1 }

</bundles_post_ra>
